<compile_context>
chip_gen: v6e
topology: v6e:2x2x1
jax: 0.10.0
libtpu: 0.0.40
codegen_flags: <defaults>
</compile_context>

<pallas_src>
import functools

import jax
import jax.numpy as jnp
from jax.experimental import pallas as pl
from jax.experimental.pallas import tpu as pltpu

_MIB = 1024 * 1024
_LANES = 128


def _round_up(x, m):
    return -(-x // m) * m


def _sublane_pack(dtype):
    # Rows per packed sublane group: 8 for f32, 16 for bf16, 32 for int8.
    return max(8, 32 // jnp.dtype(dtype).itemsize)


def _physical_vmem_bytes():
    try:
        info = pltpu.get_tpu_info()
        cap = getattr(info, "vmem_capacity_bytes", None)
        if cap:
            return int(cap)
    except Exception:
        pass
    return 64 * _MIB  # conservative fallback (v7x per-TC VMEM)


def _gap_kernel(x_ref, o_ref, *, inv_hw):
    # x_ref: (block_rows, HW) tile in VMEM; o_ref: (block_rows, 1).
    # f32 upcast fused into the lane reduction; stays off the MXU.
    s = jnp.sum(x_ref[...], axis=-1, keepdims=True, dtype=jnp.float32)
    o_ref[...] = (s * inv_hw).astype(o_ref.dtype)


def _gap_split_kernel(x_ref, o_ref, acc_ref, *, inv_hw, hw, block_hw, needs_mask):
    # hw-split path: resident f32 accumulator across the trailing ("arbitrary")
    # grid axis; padded tail lanes masked so they can't contaminate the sum.
    k = pl.program_id(1)

    @pl.when(k == 0)
    def _():
        acc_ref[...] = jnp.zeros_like(acc_ref)

    x = x_ref[...]
    if needs_mask:
        col = k * block_hw + jax.lax.broadcasted_iota(jnp.int32, x.shape, 1)
        x = jnp.where(col < hw, x, jnp.zeros_like(x))
    acc_ref[...] += jnp.sum(x, axis=-1, keepdims=True, dtype=jnp.float32)

    @pl.when(k == pl.num_programs(1) - 1)
    def _():
        o_ref[...] = (acc_ref[...] * inv_hw).astype(o_ref.dtype)


def global_avg_pool2d(x, *, vmem_budget_bytes=None):
    """x: (N, C, H, W) -> (N, C, 1, 1), mean over the spatial dims."""
    N, C, H, W = x.shape
    rows, hw = N * C, H * W
    x2d = x.reshape(rows, hw)

    dtype = x.dtype
    itemsize = jnp.dtype(dtype).itemsize
    pack = _sublane_pack(dtype)

    phys = _physical_vmem_bytes()
    if vmem_budget_bytes is None:
        # Per-input-buffer budget: ~16 MiB on v7x (64 MiB VMEM), ~24 MiB on
        # v5e/v6e (128 MiB VMEM). Double-buffered input + output + scratch
        # then stays comfortably under the physical capacity.
        vmem_budget_bytes = max(4 * _MIB, min(phys // 4, 24 * _MIB))
    vmem_limit = int(min(phys * 3 // 4,
                         max(32 * _MIB, 2 * vmem_budget_bytes + 8 * _MIB)))

    # Padded tile footprint per row: 128-lane multiple (sublane packing is
    # accounted for by keeping block_rows a multiple of `pack`).
    lanes = _round_up(hw, _LANES)
    bytes_per_row = lanes * itemsize
    max_rows_by_vmem = vmem_budget_bytes // bytes_per_row

    inv_hw = 1.0 / float(hw)
    out_shape = jax.ShapeDtypeStruct((rows, 1), dtype)

    use_simple = max_rows_by_vmem >= min(pack, rows)

    if use_simple:
        limit = max(pack, (max_rows_by_vmem // pack) * pack)
        if rows <= limit:
            # Everything fits in one tile: still split into >=2 (ideally 4)
            # steps so both v7x TensorCores issue DMA; harmless on v5e/v6e.
            if rows >= 4 * pack:
                target = 4
            elif rows >= 2 * pack:
                target = 2
            else:
                target = 1
            if target == 1:
                block_rows = rows  # full-extent block is always legal
            else:
                block_rows = min(limit, _round_up(-(-rows // target), pack))
        else:
            # Many steps anyway; a possible odd step count costs <~1 tile of
            # imbalance on v7x, not worth shrinking tiles for.
            block_rows = limit

        grid = (pl.cdiv(rows, block_rows),)
        out2d = pl.pallas_call(
            functools.partial(_gap_kernel, inv_hw=inv_hw),
            out_shape=out_shape,
            grid_spec=pltpu.PrefetchScalarGridSpec(
                num_scalar_prefetch=0,
                grid=grid,
                in_specs=[pl.BlockSpec((block_rows, hw), lambda i: (i, 0))],
                out_specs=pl.BlockSpec((block_rows, 1), lambda i: (i, 0)),
            ),
            compiler_params=pltpu.CompilerParams(
                dimension_semantics=("parallel",),
                vmem_limit_bytes=vmem_limit,
            ),
        )(x2d)
    else:
        # Even a pack-row tile of the full (lane-padded) hw exceeds the
        # budget: split the spatial axis (reduction axis last in the grid)
        # with a resident f32 accumulator.
        if rows <= pack:
            block_rows = rows  # full-extent rows block
        else:
            block_rows = min(_round_up(rows, pack), 32 * pack)
        row_footprint = max(block_rows, pack)  # sublane padding
        block_hw = vmem_budget_bytes // (row_footprint * itemsize)
        block_hw = max(_LANES, (block_hw // _LANES) * _LANES)
        block_hw = min(block_hw, _round_up(hw, _LANES))
        needs_mask = (hw % block_hw) != 0

        grid = (pl.cdiv(rows, block_rows), pl.cdiv(hw, block_hw))
        out2d = pl.pallas_call(
            functools.partial(_gap_split_kernel, inv_hw=inv_hw, hw=hw,
                              block_hw=block_hw, needs_mask=needs_mask),
            out_shape=out_shape,
            grid_spec=pltpu.PrefetchScalarGridSpec(
                num_scalar_prefetch=0,
                grid=grid,
                in_specs=[pl.BlockSpec((block_rows, block_hw),
                                       lambda i, k: (i, k))],
                out_specs=pl.BlockSpec((block_rows, 1), lambda i, k: (i, 0)),
                scratch_shapes=[pltpu.VMEM((block_rows, 1), jnp.float32)],
            ),
            compiler_params=pltpu.CompilerParams(
                dimension_semantics=("parallel", "arbitrary"),
                vmem_limit_bytes=vmem_limit,
            ),
        )(x2d)

    return out2d.reshape(N, C, 1, 1)


if __name__ == "__main__":
    key = jax.random.PRNGKey(0)

    # Main (simple streaming) path.
    x = jax.random.normal(key, (2, 4, 16, 16), dtype=jnp.float32)
    out = global_avg_pool2d(x)
    jax.block_until_ready(out)
    ref = jnp.mean(x, axis=(2, 3), keepdims=True)
    assert out.shape == (2, 4, 1, 1)
    assert jnp.allclose(out, ref, atol=1e-5, rtol=1e-5), "mismatch (simple path)"

    # Exercise the hw-split accumulator path (forced tiny budget) including a
    # masked tail block (12*12 = 144 is not a multiple of 128).
    x2 = jax.random.normal(jax.random.PRNGKey(0), (2, 3, 12, 12), dtype=jnp.float32)
    out2 = global_avg_pool2d(x2, vmem_budget_bytes=4096)
    jax.block_until_ready(out2)
    ref2 = jnp.mean(x2, axis=(2, 3), keepdims=True)
    assert out2.shape == (2, 3, 1, 1)
    assert jnp.allclose(out2, ref2, atol=1e-5, rtol=1e-5), "mismatch (split path)"

    print("KERNEL_OK")
</pallas_src>

<mosaic_0001>
module attributes {stable_mosaic.version = 11 : i64} {
  func.func @_gap_kernel(%arg0: i32, %arg1: memref<8x256xf32, #tpu.memory_space<vmem>>, %arg2: memref<8x1xf32, #tpu.memory_space<vmem>>) attributes {dimension_semantics = [#tpu.dimension_semantics<parallel>], iteration_bounds = array<i64: 1>, scalar_prefetch = 0 : i64, scratch_operands = 0 : i64, tpu.core_type = #tpu.core_type<tc>, window_params = [{transform_indices = @transform_0, window_bounds = array<i64: 8, 256>}, {transform_indices = @transform_1, window_bounds = array<i64: 8, 1>}]} {
    %c0 = arith.constant 0 : index
    %c0_0 = arith.constant 0 : index
    %0 = vector.load %arg1[%c0, %c0_0] : memref<8x256xf32, #tpu.memory_space<vmem>>, vector<8x256xf32>
    %cst = arith.constant dense<0.000000e+00> : vector<8xf32>
    %1 = vector.multi_reduction <add>, %0, %cst [1] : vector<8x256xf32> to vector<8xf32>
    %2 = vector.shape_cast %1 : vector<8xf32> to vector<8x1xf32>
    %cst_1 = arith.constant 3.906250e-03 : f32
    %3 = vector.broadcast %cst_1 : f32 to vector<8x1xf32>
    %4 = arith.mulf %2, %3 : vector<8x1xf32>
    %c0_2 = arith.constant 0 : index
    %c0_3 = arith.constant 0 : index
    %5 = vector.load %arg2[%c0_2, %c0_3] : memref<8x1xf32, #tpu.memory_space<vmem>>, vector<8x1xf32>
    tpu.vector_store %arg2[%c0_2, %c0_3], %4 {strides = array<i32>} : memref<8x1xf32, #tpu.memory_space<vmem>>, vector<8x1xf32>,
    return
  }
  func.func @transform_0(%arg0: i32) -> (i32, i32) {
    %c0_i32 = arith.constant 0 : i32
    %c0_i32_0 = arith.constant 0 : i32
    return %arg0, %c0_i32 : i32, i32
  }
  func.func @transform_1(%arg0: i32) -> (i32, i32) {
    %c0_i32 = arith.constant 0 : i32
    %c0_i32_0 = arith.constant 0 : i32
    return %arg0, %c0_i32 : i32, i32
  }
}

</mosaic_0001>

<bundles_post_ra>
// kernel: tpu_custom_call.1
= control target key start
LH: loop header
LB: loop body
LE: loop exit
PB: predicated region body
PF: predicated region fallthrough
CT: control target
= control target key end

     0   :  { %6 = vsyncpa [#allocation3], 0  ;;  %s56_s6 = smov [#allocation2]   ;;  %s73_s0 = inlined_call_operand.hbm [shape: f32[8,256], index: 0, kind: input, shape index: {}]   ;;  %s74_s1 = inlined_call_operand.vmem [shape: f32[8,1], index: 1, kind: output, shape index: {}]  }
   0x1   :  { %s13_s7 = sshll.u32 %s56_s6, 4  ;;  %s14_s7 = int_to_ptr.vmem [resolvable:$true] %s13_s7 }
   0x2   :  { %s42_s8 = scalar_lea.vmem %s14_s7, 256  ;;  %p47_p1 = scmp.lt.s32.totalorder %s14_s7, %s14_s7 }
   0x3   :  { %p43_p0 = scmp.ne.s32.totalorder %s14_s7, %s42_s8  ;;  %p48_p2 = scmp.lt.s32.totalorder %s42_s8, %s42_s8 }
   0x5   :  { %p49_p3 = por %p48_p2, %p47_p1 }
   0x7   :  { %p50_p4 = pnand %p49_p3, %p43_p0 }
   0x9   :  { %53 = shalt.err (!%p50_p4)
}
   0xa   :  { %16 = dma.hbm_to_vmem [thread:$0]  %s73_s0, 256, %s14_s7, [#allocation3]  }
   0xb   :  { %54 = dma.done.wait [#allocation3], 256  }
   0xc   :  { %55 = vsyncadd [#allocation3], 4294967040  ;;  %v20_v0 = vld [vmem:[#allocation2] sm:$0xff]  ;;  %v21_v1 = vld [vmem:[#allocation2 + $0x8] sm:$0xff]  ;;  %vm26_vm0 = vcmask 7168  }
   0xd   :  { %v22_v2 = vadd.f32 %v21_v1, %v20_v0 }
   0xf   :  { %23 = vadd.xlane.f32.xlu0 %v22_v2 }
  0x98   :  { %v24_v3 = vpop.xlane.xlu0 %23 }
  0x99   :  { %v25_v4 = vmul.f32 0.00390625, %v24_v3 }
  0x9b   :  { %27 = vst.msk [vmem:[%s74_s1] sm:$0xff] %vm26_vm0, %v25_v4 }
  0x9c   :  { %32 = vsyncpa [#allocation3], 1 }

</bundles_post_ra>
